<compile_context>
chip_gen: v7x
topology: tpu7x:2x2x1
jax: 0.10.0
libtpu: 0.0.40
codegen_flags: <defaults>
</compile_context>

<pallas_src>
import jax
import jax.numpy as jnp
from jax.experimental import pallas as pl
from jax.experimental.pallas import tpu as pltpu


def _upsampling_block_kernel(w_ref, b_ref, x_ref, rw_ref, rh_ref, x1_ref, o_ref):
    # w_ref : (Cout, Cin)        1x1 conv weight
    # b_ref : (Cout, 1)          bias
    # x_ref : (Cin, H, W)        whole low-res input image for this batch
    # rw_ref: (W, W1)            0/1 nearest column-replication matrix
    # rh_ref: (TR, H)            0/1 nearest row-selection matrix for this tile
    # x1_ref: (C1, TR, W1)       skip-connection tile
    # o_ref : (Cout+C1, TR, W1)  output tile (NCHW row tile)
    cout, cin = w_ref.shape

    rh = rh_ref[...].astype(jnp.float32)            # (TR, H)
    rw = rw_ref[...].astype(jnp.float32)            # (W, W1)
    w = w_ref[...].astype(jnp.float32)              # (Cout, Cin)
    b = b_ref[...].astype(jnp.float32)              # (Cout, 1)

    # Skip connection: direct store into the upper channel planes (no concat).
    o_ref[cout:] = x1_ref[...].astype(o_ref.dtype)

    # Nearest row gather of the low-res image for this output row tile (MXU).
    xg = [
        jnp.dot(rh, x_ref[i].astype(jnp.float32),
                preferred_element_type=jnp.float32)          # (TR, W)
        for i in range(cin)
    ]

    # 1x1 conv (broadcast VPU FMAs over tiny Cin) + nearest column replication
    # (MXU), stored channel-plane by channel-plane.
    for o in range(cout):
        acc = xg[0] * w[o:o + 1, 0:1] + b[o:o + 1, :]
        for i in range(1, cin):
            acc = acc + xg[i] * w[o:o + 1, i:i + 1]
        o_ref[o] = jnp.dot(acc, rw,
                           preferred_element_type=jnp.float32).astype(o_ref.dtype)


def _choose_row_tile(H1, W1, H, W, Cin, C1, Ctot, itemsize, n_batch,
                     budget_bytes=24 << 20):
    """Largest multiple-of-8 output-row tile that fits a VMEM budget computed
    with (8,128)-padded footprints and the real dtype itemsize, while keeping
    ~>=4 total grid steps (v7x has 2 TensorCores)."""
    if H1 <= 8:
        return H1

    def rup(v, m):
        return -(-v // m) * m

    w1p = rup(W1, 128)
    # Per-output-row VMEM cost: double-buffered out/x1/rh blocks + f32 work set.
    per_row = (2 * (Ctot + C1) * w1p * itemsize
               + 2 * rup(H, 128) * 4
               + (Cin + 2) * max(w1p, rup(W, 128)) * 4)
    # Per-batch-constant blocks (x, rw, weights), double buffered, plus slack.
    fixed = (2 * Cin * rup(H, 8) * rup(W, 128) * itemsize
             + 2 * rup(W, 8) * w1p * 4 + (1 << 16))
    rows_cap = max(8, int((budget_bytes - fixed) // max(per_row, 1)))

    desired_steps = max(1, -(-4 // n_batch))              # spatial steps wanted
    steps_cap = max(8, ((H1 // desired_steps) // 8) * 8)

    tr = min(rup(H1, 8), (rows_cap // 8) * 8, steps_cap)
    return max(8, tr)


def _pick_vmem_limit():
    limit = 48 << 20                      # safe on v7x (64 MiB physical VMEM)
    try:
        info = pltpu.get_tpu_info()
        cap = int(getattr(info, "vmem_capacity_bytes", 0) or 0)
        if cap >= (128 << 20):            # v5e / v6e: 128 MiB physical
            limit = 64 << 20
    except Exception:
        pass
    return limit


def upsampling_block(x, x1, weight, bias, *, vmem_tile_budget=24 << 20):
    """Equivalent of UpsamplingBlock.forward(x, x1).

    x      : (N, Cin, H, W)   NCHW
    x1     : (N, C1, H1, W1)  NCHW
    weight : (Cout, Cin) or (Cout, Cin, 1, 1)   nn.Conv2d(in, out, 1).weight
    bias   : (Cout,)
    returns: (N, Cout + C1, H1, W1) NCHW
    """
    N, Cin, H, W = x.shape
    N1, C1, H1, W1 = x1.shape
    assert N == N1
    weight = weight.reshape(weight.shape[0], -1)
    Cout = weight.shape[0]
    assert weight.shape[1] == Cin
    Ctot = Cout + C1
    out_dtype = jnp.result_type(x.dtype, x1.dtype)

    # Nearest-neighbour source indices: floor(dst*in/out) as exact integers.
    # (PyTorch uses a float32 scale; may differ by one pixel for exotic
    #  non-integer ratios, exact for integer scale factors.)
    hi = (jnp.arange(H1) * H) // H1                     # (H1,)
    wi = (jnp.arange(W1) * W) // W1                     # (W1,)
    # Tiny exact 0/1 selection matrices (left row-select, right col-replicate).
    rh = (hi[:, None] == jnp.arange(H)[None, :]).astype(jnp.float32)   # (H1, H)
    rw = (jnp.arange(W)[:, None] == wi[None, :]).astype(jnp.float32)   # (W, W1)

    itemsize = jnp.dtype(out_dtype).itemsize
    tr = _choose_row_tile(H1, W1, H, W, Cin, C1, Ctot, itemsize, N,
                          budget_bytes=vmem_tile_budget)
    grid = (N, pl.cdiv(H1, tr))

    w2 = weight.astype(jnp.float32)
    b2 = bias.reshape(Cout, 1).astype(jnp.float32)

    out = pl.pallas_call(
        _upsampling_block_kernel,
        out_shape=jax.ShapeDtypeStruct((N, Ctot, H1, W1), out_dtype),
        grid_spec=pltpu.PrefetchScalarGridSpec(
            num_scalar_prefetch=0,
            grid=grid,
            in_specs=[
                pl.BlockSpec((Cout, Cin), lambda n, j: (0, 0)),
                pl.BlockSpec((Cout, 1), lambda n, j: (0, 0)),
                # whole low-res image per batch (fetched only when n changes)
                pl.BlockSpec((None, Cin, H, W), lambda n, j: (n, 0, 0, 0)),
                pl.BlockSpec((W, W1), lambda n, j: (0, 0)),
                pl.BlockSpec((tr, H), lambda n, j: (j, 0)),
                pl.BlockSpec((None, C1, tr, W1), lambda n, j: (n, 0, j, 0)),
            ],
            out_specs=pl.BlockSpec((None, Ctot, tr, W1),
                                   lambda n, j: (n, 0, j, 0)),
        ),
        compiler_params=pltpu.CompilerParams(
            dimension_semantics=("parallel", "parallel"),
            vmem_limit_bytes=_pick_vmem_limit(),
        ),
    )(w2, b2, x, rw, rh, x1)
    return out


def _reference(x, x1, weight, bias):
    # pure-JAX reference of the PyTorch forward (conv -> nearest resize -> cat)
    N, Cin, H, W = x.shape
    _, C1, H1, W1 = x1.shape
    conv = jnp.einsum("nchw,oc->nohw", x, weight) + bias[None, :, None, None]
    hi = (jnp.arange(H1) * H) // H1
    wi = (jnp.arange(W1) * W) // W1
    up = conv[:, :, hi, :][:, :, :, wi]
    return jnp.concatenate([up, x1], axis=1)


if __name__ == "__main__":
    key = jax.random.PRNGKey(0)
    k_x, k_x1, k_w, k_b = jax.random.split(key, 4)

    # small deterministic shapes: UpsamplingBlock(in_channels=4, out_channels=6)
    N, Cin, H, W = 2, 4, 8, 8
    C1, H1, W1 = 3, 16, 16
    Cout = 6

    x = jax.random.normal(k_x, (N, Cin, H, W), dtype=jnp.float32)
    x1 = jax.random.normal(k_x1, (N, C1, H1, W1), dtype=jnp.float32)
    weight = jax.random.normal(k_w, (Cout, Cin), dtype=jnp.float32) * 0.1
    bias = jax.random.normal(k_b, (Cout,), dtype=jnp.float32) * 0.1

    out = upsampling_block(x, x1, weight, bias)
    out = jax.block_until_ready(out)

    ref = _reference(x, x1, weight, bias)
    assert out.shape == (N, Cout + C1, H1, W1), out.shape
    assert jnp.allclose(out, ref, atol=1e-5, rtol=1e-5)

    print("KERNEL_OK")
</pallas_src>

<mosaic_0001>
module attributes {stable_mosaic.version = 11 : i64} {
  func.func @_upsampling_block_kernel(%arg0: i32, %arg1: i32, %arg2: memref<6x4xf32, #tpu.memory_space<vmem>>, %arg3: memref<6x1xf32, #tpu.memory_space<vmem>>, %arg4: memref<1x4x8x8xf32, #tpu.memory_space<vmem>>, %arg5: memref<8x16xf32, #tpu.memory_space<vmem>>, %arg6: memref<8x8xf32, #tpu.memory_space<vmem>>, %arg7: memref<1x3x8x16xf32, #tpu.memory_space<vmem>>, %arg8: memref<1x9x8x16xf32, #tpu.memory_space<vmem>>) attributes {dimension_semantics = [#tpu.dimension_semantics<parallel>, #tpu.dimension_semantics<parallel>], iteration_bounds = array<i64: 2, 2>, scalar_prefetch = 0 : i64, scratch_operands = 0 : i64, tpu.core_type = #tpu.core_type<tc>, window_params = [{pipeline_mode = #tpu.pipeline_mode<synchronous>, transform_indices = @transform_0, window_bounds = array<i64: 6, 4>}, {pipeline_mode = #tpu.pipeline_mode<synchronous>, transform_indices = @transform_1, window_bounds = array<i64: 6, 1>}, {transform_indices = @transform_2, window_bounds = array<i64: 1, 4, 8, 8>}, {pipeline_mode = #tpu.pipeline_mode<synchronous>, transform_indices = @transform_3, window_bounds = array<i64: 8, 16>}, {transform_indices = @transform_4, window_bounds = array<i64: 8, 8>}, {transform_indices = @transform_5, window_bounds = array<i64: 1, 3, 8, 16>}, {transform_indices = @transform_6, window_bounds = array<i64: 1, 9, 8, 16>}]} {
    %c0 = arith.constant 0 : index
    %c0_0 = arith.constant 0 : index
    %0 = vector.load %arg6[%c0, %c0_0] : memref<8x8xf32, #tpu.memory_space<vmem>>, vector<8x8xf32>
    %c0_1 = arith.constant 0 : index
    %c0_2 = arith.constant 0 : index
    %1 = vector.load %arg5[%c0_1, %c0_2] : memref<8x16xf32, #tpu.memory_space<vmem>>, vector<8x16xf32>
    %c0_3 = arith.constant 0 : index
    %c0_4 = arith.constant 0 : index
    %2 = vector.load %arg2[%c0_3, %c0_4] : memref<6x4xf32, #tpu.memory_space<vmem>>, vector<6x4xf32>
    %c0_5 = arith.constant 0 : index
    %c0_6 = arith.constant 0 : index
    %3 = vector.load %arg3[%c0_5, %c0_6] : memref<6x1xf32, #tpu.memory_space<vmem>>, vector<6x1xf32>
    %c0_7 = arith.constant 0 : index
    %c0_8 = arith.constant 0 : index
    %c0_9 = arith.constant 0 : index
    %c0_10 = arith.constant 0 : index
    %4 = vector.load %arg7[%c0_7, %c0_8, %c0_9, %c0_10] : memref<1x3x8x16xf32, #tpu.memory_space<vmem>>, vector<1x3x8x16xf32>
    %5 = vector.shape_cast %4 : vector<1x3x8x16xf32> to vector<3x8x16xf32>
    %c0_11 = arith.constant 0 : index
    %c6 = arith.constant 6 : index
    %c0_12 = arith.constant 0 : index
    %c0_13 = arith.constant 0 : index
    %6 = vector.load %arg8[%c0_11, %c6, %c0_12, %c0_13] : memref<1x9x8x16xf32, #tpu.memory_space<vmem>>, vector<1x3x8x16xf32>
    %7 = vector.shape_cast %6 : vector<1x3x8x16xf32> to vector<3x8x16xf32>
    %8 = vector.shape_cast %5 : vector<3x8x16xf32> to vector<1x3x8x16xf32>
    tpu.vector_store %arg8[%c0_11, %c6, %c0_12, %c0_13], %8 {strides = array<i32>} : memref<1x9x8x16xf32, #tpu.memory_space<vmem>>, vector<1x3x8x16xf32>,
    %c0_14 = arith.constant 0 : index
    %c0_15 = arith.constant 0 : index
    %c0_16 = arith.constant 0 : index
    %c0_17 = arith.constant 0 : index
    %9 = vector.load %arg4[%c0_14, %c0_15, %c0_16, %c0_17] : memref<1x4x8x8xf32, #tpu.memory_space<vmem>>, vector<1x1x8x8xf32>
    %10 = vector.shape_cast %9 : vector<1x1x8x8xf32> to vector<8x8xf32>
    %cst = arith.constant dense<0.000000e+00> : vector<8x8xf32>
    %11 = tpu.matmul %0, %10, %cst {dimension_numbers = #tpu.dot_dimension_numbers<[1], [0], [0], [1], [0, 0, 1, 1], [], []>} : vector<8x8xf32>, vector<8x8xf32>, vector<8x8xf32> -> vector<8x8xf32>
    %c0_18 = arith.constant 0 : index
    %c1 = arith.constant 1 : index
    %c0_19 = arith.constant 0 : index
    %c0_20 = arith.constant 0 : index
    %12 = vector.load %arg4[%c0_18, %c1, %c0_19, %c0_20] : memref<1x4x8x8xf32, #tpu.memory_space<vmem>>, vector<1x1x8x8xf32>
    %13 = vector.shape_cast %12 : vector<1x1x8x8xf32> to vector<8x8xf32>
    %cst_21 = arith.constant dense<0.000000e+00> : vector<8x8xf32>
    %14 = tpu.matmul %0, %13, %cst_21 {dimension_numbers = #tpu.dot_dimension_numbers<[1], [0], [0], [1], [0, 0, 1, 1], [], []>} : vector<8x8xf32>, vector<8x8xf32>, vector<8x8xf32> -> vector<8x8xf32>
    %c0_22 = arith.constant 0 : index
    %c2 = arith.constant 2 : index
    %c0_23 = arith.constant 0 : index
    %c0_24 = arith.constant 0 : index
    %15 = vector.load %arg4[%c0_22, %c2, %c0_23, %c0_24] : memref<1x4x8x8xf32, #tpu.memory_space<vmem>>, vector<1x1x8x8xf32>
    %16 = vector.shape_cast %15 : vector<1x1x8x8xf32> to vector<8x8xf32>
    %cst_25 = arith.constant dense<0.000000e+00> : vector<8x8xf32>
    %17 = tpu.matmul %0, %16, %cst_25 {dimension_numbers = #tpu.dot_dimension_numbers<[1], [0], [0], [1], [0, 0, 1, 1], [], []>} : vector<8x8xf32>, vector<8x8xf32>, vector<8x8xf32> -> vector<8x8xf32>
    %c0_26 = arith.constant 0 : index
    %c3 = arith.constant 3 : index
    %c0_27 = arith.constant 0 : index
    %c0_28 = arith.constant 0 : index
    %18 = vector.load %arg4[%c0_26, %c3, %c0_27, %c0_28] : memref<1x4x8x8xf32, #tpu.memory_space<vmem>>, vector<1x1x8x8xf32>
    %19 = vector.shape_cast %18 : vector<1x1x8x8xf32> to vector<8x8xf32>
    %cst_29 = arith.constant dense<0.000000e+00> : vector<8x8xf32>
    %20 = tpu.matmul %0, %19, %cst_29 {dimension_numbers = #tpu.dot_dimension_numbers<[1], [0], [0], [1], [0, 0, 1, 1], [], []>} : vector<8x8xf32>, vector<8x8xf32>, vector<8x8xf32> -> vector<8x8xf32>
    %21 = vector.extract_strided_slice %2 {offsets = [0, 0], sizes = [1, 1], strides = [1, 1]} : vector<6x4xf32> to vector<1x1xf32>
    %22 = vector.broadcast %21 : vector<1x1xf32> to vector<8x8xf32>
    %23 = arith.mulf %11, %22 : vector<8x8xf32>
    %24 = vector.extract_strided_slice %3 {offsets = [0, 0], sizes = [1, 1], strides = [1, 1]} : vector<6x1xf32> to vector<1x1xf32>
    %25 = vector.broadcast %24 : vector<1x1xf32> to vector<8x8xf32>
    %26 = arith.addf %23, %25 : vector<8x8xf32>
    %27 = vector.extract_strided_slice %2 {offsets = [0, 1], sizes = [1, 1], strides = [1, 1]} : vector<6x4xf32> to vector<1x1xf32>
    %28 = vector.broadcast %27 : vector<1x1xf32> to vector<8x8xf32>
    %29 = arith.mulf %14, %28 : vector<8x8xf32>
    %30 = arith.addf %26, %29 : vector<8x8xf32>
    %31 = vector.extract_strided_slice %2 {offsets = [0, 2], sizes = [1, 1], strides = [1, 1]} : vector<6x4xf32> to vector<1x1xf32>
    %32 = vector.broadcast %31 : vector<1x1xf32> to vector<8x8xf32>
    %33 = arith.mulf %17, %32 : vector<8x8xf32>
    %34 = arith.addf %30, %33 : vector<8x8xf32>
    %35 = vector.extract_strided_slice %2 {offsets = [0, 3], sizes = [1, 1], strides = [1, 1]} : vector<6x4xf32> to vector<1x1xf32>
    %36 = vector.broadcast %35 : vector<1x1xf32> to vector<8x8xf32>
    %37 = arith.mulf %20, %36 : vector<8x8xf32>
    %38 = arith.addf %34, %37 : vector<8x8xf32>
    %cst_30 = arith.constant dense<0.000000e+00> : vector<8x16xf32>
    %39 = tpu.matmul %38, %1, %cst_30 {dimension_numbers = #tpu.dot_dimension_numbers<[1], [0], [0], [1], [0, 0, 1, 1], [], []>} : vector<8x8xf32>, vector<8x16xf32>, vector<8x16xf32> -> vector<8x16xf32>
    %c0_31 = arith.constant 0 : index
    %c0_32 = arith.constant 0 : index
    %c0_33 = arith.constant 0 : index
    %c0_34 = arith.constant 0 : index
    %40 = vector.load %arg8[%c0_31, %c0_32, %c0_33, %c0_34] : memref<1x9x8x16xf32, #tpu.memory_space<vmem>>, vector<1x1x8x16xf32>
    %41 = vector.shape_cast %40 : vector<1x1x8x16xf32> to vector<8x16xf32>
    %42 = vector.shape_cast %39 : vector<8x16xf32> to vector<1x1x8x16xf32>
    tpu.vector_store %arg8[%c0_31, %c0_32, %c0_33, %c0_34], %42 {strides = array<i32>} : memref<1x9x8x16xf32, #tpu.memory_space<vmem>>, vector<1x1x8x16xf32>,
    %43 = vector.extract_strided_slice %2 {offsets = [1, 0], sizes = [1, 1], strides = [1, 1]} : vector<6x4xf32> to vector<1x1xf32>
    %44 = vector.broadcast %43 : vector<1x1xf32> to vector<8x8xf32>
    %45 = arith.mulf %11, %44 : vector<8x8xf32>
    %46 = vector.extract_strided_slice %3 {offsets = [1, 0], sizes = [1, 1], strides = [1, 1]} : vector<6x1xf32> to vector<1x1xf32>
    %47 = vector.broadcast %46 : vector<1x1xf32> to vector<8x8xf32>
    %48 = arith.addf %45, %47 : vector<8x8xf32>
    %49 = vector.extract_strided_slice %2 {offsets = [1, 1], sizes = [1, 1], strides = [1, 1]} : vector<6x4xf32> to vector<1x1xf32>
    %50 = vector.broadcast %49 : vector<1x1xf32> to vector<8x8xf32>
    %51 = arith.mulf %14, %50 : vector<8x8xf32>
    %52 = arith.addf %48, %51 : vector<8x8xf32>
    %53 = vector.extract_strided_slice %2 {offsets = [1, 2], sizes = [1, 1], strides = [1, 1]} : vector<6x4xf32> to vector<1x1xf32>
    %54 = vector.broadcast %53 : vector<1x1xf32> to vector<8x8xf32>
    %55 = arith.mulf %17, %54 : vector<8x8xf32>
    %56 = arith.addf %52, %55 : vector<8x8xf32>
    %57 = vector.extract_strided_slice %2 {offsets = [1, 3], sizes = [1, 1], strides = [1, 1]} : vector<6x4xf32> to vector<1x1xf32>
    %58 = vector.broadcast %57 : vector<1x1xf32> to vector<8x8xf32>
    %59 = arith.mulf %20, %58 : vector<8x8xf32>
    %60 = arith.addf %56, %59 : vector<8x8xf32>
    %cst_35 = arith.constant dense<0.000000e+00> : vector<8x16xf32>
    %61 = tpu.matmul %60, %1, %cst_35 {dimension_numbers = #tpu.dot_dimension_numbers<[1], [0], [0], [1], [0, 0, 1, 1], [], []>} : vector<8x8xf32>, vector<8x16xf32>, vector<8x16xf32> -> vector<8x16xf32>
    %c0_36 = arith.constant 0 : index
    %c1_37 = arith.constant 1 : index
    %c0_38 = arith.constant 0 : index
    %c0_39 = arith.constant 0 : index
    %62 = vector.load %arg8[%c0_36, %c1_37, %c0_38, %c0_39] : memref<1x9x8x16xf32, #tpu.memory_space<vmem>>, vector<1x1x8x16xf32>
    %63 = vector.shape_cast %62 : vector<1x1x8x16xf32> to vector<8x16xf32>
    %64 = vector.shape_cast %61 : vector<8x16xf32> to vector<1x1x8x16xf32>
    tpu.vector_store %arg8[%c0_36, %c1_37, %c0_38, %c0_39], %64 {strides = array<i32>} : memref<1x9x8x16xf32, #tpu.memory_space<vmem>>, vector<1x1x8x16xf32>,
    %65 = vector.extract_strided_slice %2 {offsets = [2, 0], sizes = [1, 1], strides = [1, 1]} : vector<6x4xf32> to vector<1x1xf32>
    %66 = vector.broadcast %65 : vector<1x1xf32> to vector<8x8xf32>
    %67 = arith.mulf %11, %66 : vector<8x8xf32>
    %68 = vector.extract_strided_slice %3 {offsets = [2, 0], sizes = [1, 1], strides = [1, 1]} : vector<6x1xf32> to vector<1x1xf32>
    %69 = vector.broadcast %68 : vector<1x1xf32> to vector<8x8xf32>
    %70 = arith.addf %67, %69 : vector<8x8xf32>
    %71 = vector.extract_strided_slice %2 {offsets = [2, 1], sizes = [1, 1], strides = [1, 1]} : vector<6x4xf32> to vector<1x1xf32>
    %72 = vector.broadcast %71 : vector<1x1xf32> to vector<8x8xf32>
    %73 = arith.mulf %14, %72 : vector<8x8xf32>
    %74 = arith.addf %70, %73 : vector<8x8xf32>
    %75 = vector.extract_strided_slice %2 {offsets = [2, 2], sizes = [1, 1], strides = [1, 1]} : vector<6x4xf32> to vector<1x1xf32>
    %76 = vector.broadcast %75 : vector<1x1xf32> to vector<8x8xf32>
    %77 = arith.mulf %17, %76 : vector<8x8xf32>
    %78 = arith.addf %74, %77 : vector<8x8xf32>
    %79 = vector.extract_strided_slice %2 {offsets = [2, 3], sizes = [1, 1], strides = [1, 1]} : vector<6x4xf32> to vector<1x1xf32>
    %80 = vector.broadcast %79 : vector<1x1xf32> to vector<8x8xf32>
    %81 = arith.mulf %20, %80 : vector<8x8xf32>
    %82 = arith.addf %78, %81 : vector<8x8xf32>
    %cst_40 = arith.constant dense<0.000000e+00> : vector<8x16xf32>
    %83 = tpu.matmul %82, %1, %cst_40 {dimension_numbers = #tpu.dot_dimension_numbers<[1], [0], [0], [1], [0, 0, 1, 1], [], []>} : vector<8x8xf32>, vector<8x16xf32>, vector<8x16xf32> -> vector<8x16xf32>
    %c0_41 = arith.constant 0 : index
    %c2_42 = arith.constant 2 : index
    %c0_43 = arith.constant 0 : index
    %c0_44 = arith.constant 0 : index
    %84 = vector.load %arg8[%c0_41, %c2_42, %c0_43, %c0_44] : memref<1x9x8x16xf32, #tpu.memory_space<vmem>>, vector<1x1x8x16xf32>
    %85 = vector.shape_cast %84 : vector<1x1x8x16xf32> to vector<8x16xf32>
    %86 = vector.shape_cast %83 : vector<8x16xf32> to vector<1x1x8x16xf32>
    tpu.vector_store %arg8[%c0_41, %c2_42, %c0_43, %c0_44], %86 {strides = array<i32>} : memref<1x9x8x16xf32, #tpu.memory_space<vmem>>, vector<1x1x8x16xf32>,
    %87 = vector.extract_strided_slice %2 {offsets = [3, 0], sizes = [1, 1], strides = [1, 1]} : vector<6x4xf32> to vector<1x1xf32>
    %88 = vector.broadcast %87 : vector<1x1xf32> to vector<8x8xf32>
    %89 = arith.mulf %11, %88 : vector<8x8xf32>
    %90 = vector.extract_strided_slice %3 {offsets = [3, 0], sizes = [1, 1], strides = [1, 1]} : vector<6x1xf32> to vector<1x1xf32>
    %91 = vector.broadcast %90 : vector<1x1xf32> to vector<8x8xf32>
    %92 = arith.addf %89, %91 : vector<8x8xf32>
    %93 = vector.extract_strided_slice %2 {offsets = [3, 1], sizes = [1, 1], strides = [1, 1]} : vector<6x4xf32> to vector<1x1xf32>
    %94 = vector.broadcast %93 : vector<1x1xf32> to vector<8x8xf32>
    %95 = arith.mulf %14, %94 : vector<8x8xf32>
    %96 = arith.addf %92, %95 : vector<8x8xf32>
    %97 = vector.extract_strided_slice %2 {offsets = [3, 2], sizes = [1, 1], strides = [1, 1]} : vector<6x4xf32> to vector<1x1xf32>
    %98 = vector.broadcast %97 : vector<1x1xf32> to vector<8x8xf32>
    %99 = arith.mulf %17, %98 : vector<8x8xf32>
    %100 = arith.addf %96, %99 : vector<8x8xf32>
    %101 = vector.extract_strided_slice %2 {offsets = [3, 3], sizes = [1, 1], strides = [1, 1]} : vector<6x4xf32> to vector<1x1xf32>
    %102 = vector.broadcast %101 : vector<1x1xf32> to vector<8x8xf32>
    %103 = arith.mulf %20, %102 : vector<8x8xf32>
    %104 = arith.addf %100, %103 : vector<8x8xf32>
    %cst_45 = arith.constant dense<0.000000e+00> : vector<8x16xf32>
    %105 = tpu.matmul %104, %1, %cst_45 {dimension_numbers = #tpu.dot_dimension_numbers<[1], [0], [0], [1], [0, 0, 1, 1], [], []>} : vector<8x8xf32>, vector<8x16xf32>, vector<8x16xf32> -> vector<8x16xf32>
    %c0_46 = arith.constant 0 : index
    %c3_47 = arith.constant 3 : index
    %c0_48 = arith.constant 0 : index
    %c0_49 = arith.constant 0 : index
    %106 = vector.load %arg8[%c0_46, %c3_47, %c0_48, %c0_49] : memref<1x9x8x16xf32, #tpu.memory_space<vmem>>, vector<1x1x8x16xf32>
    %107 = vector.shape_cast %106 : vector<1x1x8x16xf32> to vector<8x16xf32>
    %108 = vector.shape_cast %105 : vector<8x16xf32> to vector<1x1x8x16xf32>
    tpu.vector_store %arg8[%c0_46, %c3_47, %c0_48, %c0_49], %108 {strides = array<i32>} : memref<1x9x8x16xf32, #tpu.memory_space<vmem>>, vector<1x1x8x16xf32>,
    %109 = vector.extract_strided_slice %2 {offsets = [4, 0], sizes = [1, 1], strides = [1, 1]} : vector<6x4xf32> to vector<1x1xf32>
    %110 = vector.broadcast %109 : vector<1x1xf32> to vector<8x8xf32>
    %111 = arith.mulf %11, %110 : vector<8x8xf32>
    %112 = vector.extract_strided_slice %3 {offsets = [4, 0], sizes = [1, 1], strides = [1, 1]} : vector<6x1xf32> to vector<1x1xf32>
    %113 = vector.broadcast %112 : vector<1x1xf32> to vector<8x8xf32>
    %114 = arith.addf %111, %113 : vector<8x8xf32>
    %115 = vector.extract_strided_slice %2 {offsets = [4, 1], sizes = [1, 1], strides = [1, 1]} : vector<6x4xf32> to vector<1x1xf32>
    %116 = vector.broadcast %115 : vector<1x1xf32> to vector<8x8xf32>
    %117 = arith.mulf %14, %116 : vector<8x8xf32>
    %118 = arith.addf %114, %117 : vector<8x8xf32>
    %119 = vector.extract_strided_slice %2 {offsets = [4, 2], sizes = [1, 1], strides = [1, 1]} : vector<6x4xf32> to vector<1x1xf32>
    %120 = vector.broadcast %119 : vector<1x1xf32> to vector<8x8xf32>
    %121 = arith.mulf %17, %120 : vector<8x8xf32>
    %122 = arith.addf %118, %121 : vector<8x8xf32>
    %123 = vector.extract_strided_slice %2 {offsets = [4, 3], sizes = [1, 1], strides = [1, 1]} : vector<6x4xf32> to vector<1x1xf32>
    %124 = vector.broadcast %123 : vector<1x1xf32> to vector<8x8xf32>
    %125 = arith.mulf %20, %124 : vector<8x8xf32>
    %126 = arith.addf %122, %125 : vector<8x8xf32>
    %cst_50 = arith.constant dense<0.000000e+00> : vector<8x16xf32>
    %127 = tpu.matmul %126, %1, %cst_50 {dimension_numbers = #tpu.dot_dimension_numbers<[1], [0], [0], [1], [0, 0, 1, 1], [], []>} : vector<8x8xf32>, vector<8x16xf32>, vector<8x16xf32> -> vector<8x16xf32>
    %c0_51 = arith.constant 0 : index
    %c4 = arith.constant 4 : index
    %c0_52 = arith.constant 0 : index
    %c0_53 = arith.constant 0 : index
    %128 = vector.load %arg8[%c0_51, %c4, %c0_52, %c0_53] : memref<1x9x8x16xf32, #tpu.memory_space<vmem>>, vector<1x1x8x16xf32>
    %129 = vector.shape_cast %128 : vector<1x1x8x16xf32> to vector<8x16xf32>
    %130 = vector.shape_cast %127 : vector<8x16xf32> to vector<1x1x8x16xf32>
    tpu.vector_store %arg8[%c0_51, %c4, %c0_52, %c0_53], %130 {strides = array<i32>} : memref<1x9x8x16xf32, #tpu.memory_space<vmem>>, vector<1x1x8x16xf32>,
    %131 = vector.extract_strided_slice %2 {offsets = [5, 0], sizes = [1, 1], strides = [1, 1]} : vector<6x4xf32> to vector<1x1xf32>
    %132 = vector.broadcast %131 : vector<1x1xf32> to vector<8x8xf32>
    %133 = arith.mulf %11, %132 : vector<8x8xf32>
    %134 = vector.extract_strided_slice %3 {offsets = [5, 0], sizes = [1, 1], strides = [1, 1]} : vector<6x1xf32> to vector<1x1xf32>
    %135 = vector.broadcast %134 : vector<1x1xf32> to vector<8x8xf32>
    %136 = arith.addf %133, %135 : vector<8x8xf32>
    %137 = vector.extract_strided_slice %2 {offsets = [5, 1], sizes = [1, 1], strides = [1, 1]} : vector<6x4xf32> to vector<1x1xf32>
    %138 = vector.broadcast %137 : vector<1x1xf32> to vector<8x8xf32>
    %139 = arith.mulf %14, %138 : vector<8x8xf32>
    %140 = arith.addf %136, %139 : vector<8x8xf32>
    %141 = vector.extract_strided_slice %2 {offsets = [5, 2], sizes = [1, 1], strides = [1, 1]} : vector<6x4xf32> to vector<1x1xf32>
    %142 = vector.broadcast %141 : vector<1x1xf32> to vector<8x8xf32>
    %143 = arith.mulf %17, %142 : vector<8x8xf32>
    %144 = arith.addf %140, %143 : vector<8x8xf32>
    %145 = vector.extract_strided_slice %2 {offsets = [5, 3], sizes = [1, 1], strides = [1, 1]} : vector<6x4xf32> to vector<1x1xf32>
    %146 = vector.broadcast %145 : vector<1x1xf32> to vector<8x8xf32>
    %147 = arith.mulf %20, %146 : vector<8x8xf32>
    %148 = arith.addf %144, %147 : vector<8x8xf32>
    %cst_54 = arith.constant dense<0.000000e+00> : vector<8x16xf32>
    %149 = tpu.matmul %148, %1, %cst_54 {dimension_numbers = #tpu.dot_dimension_numbers<[1], [0], [0], [1], [0, 0, 1, 1], [], []>} : vector<8x8xf32>, vector<8x16xf32>, vector<8x16xf32> -> vector<8x16xf32>
    %c0_55 = arith.constant 0 : index
    %c5 = arith.constant 5 : index
    %c0_56 = arith.constant 0 : index
    %c0_57 = arith.constant 0 : index
    %150 = vector.load %arg8[%c0_55, %c5, %c0_56, %c0_57] : memref<1x9x8x16xf32, #tpu.memory_space<vmem>>, vector<1x1x8x16xf32>
    %151 = vector.shape_cast %150 : vector<1x1x8x16xf32> to vector<8x16xf32>
    %152 = vector.shape_cast %149 : vector<8x16xf32> to vector<1x1x8x16xf32>
    tpu.vector_store %arg8[%c0_55, %c5, %c0_56, %c0_57], %152 {strides = array<i32>} : memref<1x9x8x16xf32, #tpu.memory_space<vmem>>, vector<1x1x8x16xf32>,
    return
  }
  func.func @transform_0(%arg0: i32, %arg1: i32) -> (i32, i32) {
    %c0_i32 = arith.constant 0 : i32
    %c0_i32_0 = arith.constant 0 : i32
    %c0_i32_1 = arith.constant 0 : i32
    return %c0_i32, %c0_i32_0 : i32, i32
  }
  func.func @transform_1(%arg0: i32, %arg1: i32) -> (i32, i32) {
    %c0_i32 = arith.constant 0 : i32
    %c0_i32_0 = arith.constant 0 : i32
    %c0_i32_1 = arith.constant 0 : i32
    return %c0_i32, %c0_i32_0 : i32, i32
  }
  func.func @transform_2(%arg0: i32, %arg1: i32) -> (i32, i32, i32, i32) {
    %c0_i32 = arith.constant 0 : i32
    %c0_i32_0 = arith.constant 0 : i32
    %c0_i32_1 = arith.constant 0 : i32
    %c0_i32_2 = arith.constant 0 : i32
    return %arg0, %c0_i32, %c0_i32_0, %c0_i32_1 : i32, i32, i32, i32
  }
  func.func @transform_3(%arg0: i32, %arg1: i32) -> (i32, i32) {
    %c0_i32 = arith.constant 0 : i32
    %c0_i32_0 = arith.constant 0 : i32
    %c0_i32_1 = arith.constant 0 : i32
    return %c0_i32, %c0_i32_0 : i32, i32
  }
  func.func @transform_4(%arg0: i32, %arg1: i32) -> (i32, i32) {
    %c0_i32 = arith.constant 0 : i32
    %c0_i32_0 = arith.constant 0 : i32
    return %arg1, %c0_i32 : i32, i32
  }
  func.func @transform_5(%arg0: i32, %arg1: i32) -> (i32, i32, i32, i32) {
    %c0_i32 = arith.constant 0 : i32
    %c0_i32_0 = arith.constant 0 : i32
    %c0_i32_1 = arith.constant 0 : i32
    return %arg0, %c0_i32, %arg1, %c0_i32_0 : i32, i32, i32, i32
  }
  func.func @transform_6(%arg0: i32, %arg1: i32) -> (i32, i32, i32, i32) {
    %c0_i32 = arith.constant 0 : i32
    %c0_i32_0 = arith.constant 0 : i32
    %c0_i32_1 = arith.constant 0 : i32
    return %arg0, %c0_i32, %arg1, %c0_i32_0 : i32, i32, i32, i32
  }
}

</mosaic_0001>

<bundles_post_ra>
// kernel: tpu_custom_call.1
= control target key start
LH: loop header
LB: loop body
LE: loop exit
PB: predicated region body
PF: predicated region fallthrough
CT: control target
= control target key end

     0   :  { %s2448_s0 = inlined_call_operand.vmem [shape: f32[6,4], index: 0, kind: input, shape index: {}]   ;;  %s2449_s1 = inlined_call_operand.vmem [shape: f32[6,1], index: 1, kind: input, shape index: {}]   ;;  %s2450_s2 = inlined_call_operand.hbm [shape: f32[2,4,8,8], index: 2, kind: input, shape index: {}]   ;;  %s2451_s3 = inlined_call_operand.vmem [shape: f32[8,16], index: 3, kind: input, shape index: {}]   ;;  %s2452_s4 = inlined_call_operand.vmem [shape: f32[16,8], index: 4, kind: input, shape index: {}]   ;;  %s2453_s5 = inlined_call_operand.hbm [shape: f32[2,3,16,16], index: 5, kind: input, shape index: {}]   ;;  %s2454_s6 = inlined_call_operand.hbm [shape: f32[2,9,16,16], index: 6, kind: output, shape index: {}]  }
   0x1   :  { %2476 = sst [smem:[#allocation25_spill]] %s2448_s0 }
   0x2   :  { %2477 = sst [smem:[#allocation26_spill]] %s2449_s1 }
   0x3   :  { %2478 = sst [smem:[#allocation27_spill]] %s2450_s2 }
   0x4   :  { %2479 = sst [smem:[#allocation28_spill]] %s2451_s3 }
   0x5   :  { %2480 = sst [smem:[#allocation29_spill]] %s2452_s4 }
   0x6   :  { %2481 = sst [smem:[#allocation30_spill]] %s2453_s5 }
   0x7   :  { %2482 = sst [smem:[#allocation31_spill]] %s2454_s6 }
   0x8   :  { %11 = vsyncpa [#allocation3], 0 }
   0x9   :  { %13 = vsyncpa [#allocation3 + $0x1], 0 }
   0xa   :  { %14 = vsyncpa [#allocation6], 0 }
   0xb   :  { %16 = vsyncpa [#allocation6 + $0x1], 0 }
   0xc   :  { %17 = vsyncpa [#allocation4], 0 }
   0xd   :  { %19 = vsyncpa [#allocation4 + $0x1], 0  ;;  %s1946_s21 = smov 0   ;;  %s1948_s22 = smov 0  }
   0xe   :  { %s1950_s23 = smov 0   ;;  %s1952_s24 = smov 0  }
   0xf   :  { %s1954_s25 = smov 0   ;;  %s1956_s26 = smov 0  }
  0x10   :  { %s1958_s27 = smov 0   ;;  %s1960_s28 = smov 0  }
  0x11   :  { %s1962_s29 = smov 0   ;;  %s1964_s30 = smov 0  }
  0x12   :  { %s1966_s7 = smov 0  }
  0x13 LB: > { %2483 = sst [smem:[#allocation11_spill]] %s1855_s21  ;;  %s2455_s8 = sadd.s32 4294967295, %s1895_s7   ;;  %s1895_s7 = sphi %s1966_s7, %s25_s7   ;;  %s1891_s30 = sphi %s1964_s30, %s2538_s30   ;;  %s1887_s29 = sphi %s1962_s29, %s2537_s29   ;;  %s1883_s28 = sphi %s1960_s28, %s2536_s28   ;;  %s1879_s27 = sphi %s1958_s27, %s2535_s27   ;;  %s1875_s26 = sphi %s1956_s26, %s2534_s26   ;;  %s1871_s25 = sphi %s1954_s25, %s2533_s25   ;;  %s1867_s24 = sphi %s1952_s24, %s2532_s24   ;;  %s1863_s23 = sphi %s1950_s23, %s2531_s23   ;;  %s1859_s22 = sphi %s1948_s22, %s2530_s22   ;;  %s1855_s21 = sphi %s1946_s21, %s2529_s21  }
  0x14   : > { %2484 = sst [smem:[#allocation12_spill]] %s1859_s22  ;;  %s37_s9 = sadd.s32 1, %s1891_s30 }
  0x15   : > { %2485 = sst [smem:[#allocation13_spill]] %s1863_s23  ;;  %p93_p0 = scmp.ne.s32.totalorder %s1875_s26, %s1871_s25 }
  0x16   : > { %2486 = sst [smem:[#allocation14_spill]] %s1871_s25  ;;  %p2457_p1 = scmp.eq.s32.totalorder %s1895_s7, 0 }
  0x17   : > { %2487 = sst [smem:[#allocation15_spill]] %s1875_s26  ;;  %p99_p2 = scmp.ne.s32.totalorder %s1871_s25, %s1867_s24 }
  0x18   : > { %2488 = sst [smem:[#allocation16_spill]] %s1883_s28  ;;  %p2008_p3 = scmp.eq.s32.totalorder %s2455_s8, 0 }
  0x19   : > { %2489 = sst [smem:[#allocation17_spill]] %s1887_s29  ;;  %p95_p4 = por %p2457_p1, %p93_p0 }
  0x1a   : > { %2490 = sst [smem:[#allocation18_spill]] %s1891_s30  ;;  %p2456_p5 = scmp.lt.s32.totalorder %s1895_s7, 4 }
  0x1b   : > { %p2017_p6 = por %p2008_p3, %p99_p2  ;;  %s235_s13 = sand.u32 1, %s1875_s26  }
  0x1c   : > { %s1424_s14 = sshll.u32 %s235_s13, 5  ;;  %s1455_s15 = sshll.u32 %s1891_s30, 9 }
  0x1d   : > { %s2492_s12 = scalar_select %p2017_p6, 1, 0 }
  0x1e   : > { %s2493_s2 = sld [smem:[#allocation27_spill]]  ;;  %s239_s19 = scalar_lea.vmem [#allocation2], %s1424_s14 }
  0x1f   : > { %s246_s20 = sshll.u32 %s239_s19, 4  ;;  %p2032_p7 = pnand %p2456_p5, %p95_p4  ;;  %s2028_s20 = int_to_ptr.vmem [resolvable:$true] %s246_s20 }
  0x20   : > { %s2037_s10 = scalar_lea.sflag [#allocation3], %s235_s13 }
  0x21   : > { %p1711_p10 = pneg %p2032_p7 }
  0x24   : > { %s2026_s18 = scalar_lea.hbm %s2493_s2, %s1455_s15  ;;  %s1714_s17 = scalar_lea.hbm %s2493_s2, 1024 }
  0x25   : > { %s1709_s15 = scalar_lea.hbm %s2026_s18, 512  ;;  %p1715_p13 = scmp.lt.u32.totalorder %s2026_s18, %s2493_s2 }
  0x26   : > { %p1710_p9 = scmp.ne.s32.totalorder %s2026_s18, %s1709_s15  ;;  %p1716_p0 = scmp.lt.u32.totalorder %s1714_s17, %s1709_s15 }
  0x27   : > { %p1718_p4 = scmp.lt.u32.totalorder %s1709_s15, %s2026_s18 }
  0x28   : > { %p1712_p11 = pnand %p1711_p10, %p1710_p9  ;;  %p1717_p2 = por %p1716_p0, %p1715_p13 }
  0x2a   : > { %p1713_p12 = pneg %p1712_p11  ;;  %p1719_p5 = por %p1718_p4, %p1717_p2 }
  0x2c   : > { %p1720_p1 = pnand %p1719_p5, %p1713_p12 }
  0x2e   : > { %1723 = shalt.err (!%p1720_p1)
}
  0x2f   : > { %s1724_s13 = scalar_lea.vmem %s2028_s20, 512  ;;  %s1897_s14 = smov [#allocation2]  }
  0x30   : > { %p1725_p9 = scmp.ne.s32.totalorder %s2028_s20, %s1724_s13  ;;  %s1729_s16 = sshll.u32 %s1897_s14, 4  ;;  %s1730_s16 = int_to_ptr.vmem [resolvable:$false] %s1729_s16 }
  0x31   : > { %s1731_s8 = scalar_lea.vmem %s1730_s16, 1024  ;;  %p1732_p6 = scmp.lt.s32.totalorder %s2028_s20, %s1730_s16 }
  0x32   : > { %p1727_p11 = pnand %p1725_p9, %p1711_p10  ;;  %p1733_p13 = scmp.lt.s32.totalorder %s1731_s8, %s1724_s13 }
  0x34   : > { %p1728_p8 = pneg %p1727_p11  ;;  %p1734_p0 = por %p1733_p13, %p1732_p6 }
  0x36   : > { %p1735_p2 = pnand %p1734_p0, %p1728_p8 }
  0x38   : > { %1738 = shalt.err (!%p1735_p2)
}
  0x39   : > { %s2459_s15 = smov 128   ;;  %s2460_s17 = smov 8  }
  0x3a   : > { %1600 = dma.hbm_to_vmem [thread:$0]  (!%p2032_p7), %s2026_s18, 512, %s2028_s20, %s2037_s10, %s2459_s15, %s2459_s15, %s2460_s17  }
  0x3b   : > { %p283_p1 = scmp.lt.s32.totalorder %s1895_s7, 5  ;;  %p2495_p5 = scmp.ge.s32.totalorder %s1895_s7, 1 }
  0x3c   : > { %s1421_s13 = sadd.s32 4294967294, %s1895_s7   ;;  %s34_s14 = sadd.s32 1, %s1887_s29 }
  0x3d   : > { %p2071_p6 = pnand %p2495_p5, %p283_p1  ;;  %p35_p8 = scmp.ge.s32.totalorder %s34_s14, 2 }
  0x3e   : > { %s161_s16 = sadd.s32 1, %s1863_s23  ;;  %p168_p10 = scmp.ne.s32.totalorder %s1863_s23, %s1859_s22 }
  0x3f   : > { %p174_p12 = scmp.ne.s32.totalorder %s1859_s22, %s1855_s21  ;;  %s2540_s14 = smov (%p35_p8, %s34_s14), 0 }
  0x40   : > { %2497 = sst [smem:[#allocation19_spill]] %s2540_s14  ;;  %s2542_s9 = smov (!%p35_p8, %s37_s9), %s1891_s30 }
  0x41   : > { %s157_s10 = ssub.s32 %s1887_s29, %s2540_s14  ;;  %p2498_p7 = scmp.eq.s32.totalorder %s1895_s7, 0 }
  0x42   : > { %p39_p9 = scmp.ge.s32.totalorder %s2542_s9, 2  ;;  %p2097_p11 = por %p174_p12, %p2008_p3 }
  0x43   : > { %p2091_p4 = por %p168_p10, %p2498_p7  ;;  %s2501_s24 = sadd.s32 4294967295, %s1895_s7  }
  0x44   : > { %s2500_s20 = scalar_select %p2097_p11, 1, 0 }
  0x45   : > { %p200_p13 = scmp.eq.s32.totalorder %s2501_s24, 3  ;;  %p206_p0 = scmp.eq.s32.totalorder %s1421_s13, 3 }
  0x46   : > { %s2544_s9 = smov (%p39_p9, %s2542_s9), 0  ;;  %s263_s17 = sand.u32 1, %s1863_s23  }
  0x47   : > { %2502 = sst [smem:[#allocation20_spill]] %s2544_s9  ;;  %p2105_p2 = por %p200_p13, %p168_p10 }
  0x48   : > { %p2109_p1 = por %p206_p0, %p174_p12  ;;  %s83_s11 = ssub.s32 %s1891_s30, %s2544_s9 }
  0x49   : > { %s2503_s8 = scalar_select %p2105_p2, 1, 0 }
  0x4a   : > { %s2505_s15 = scalar_select %p2109_p1, 1, 0 }
  0x4b   : > { %2504 = sst [smem:[#allocation21_spill]] %s2503_s8  ;;  %p84_p3 = scmp.eq.s32.totalorder %s83_s11, 0 }
  0x4c   : > { %2506 = sst [smem:[#allocation22_spill]] %s2505_s15  ;;  %s158_s2 = sor.u32 %s157_s10, %s83_s11 }
  0x4d   : > { %p159_p5 = scmp.eq.s32.totalorder %s158_s2, 0  ;;  %s2507_s14 = sadd.s32 1, %s1875_s26 }
  0x4e   : > { %s2119_s21 = scalar_select %p84_p3, %s1875_s26, %s2507_s14  }
  0x4f   : > { %s2122_s13 = scalar_select %p159_p5, %s1863_s23, %s161_s16  }
  0x50   : > { %2508 = sst [smem:[#allocation23_spill]] %s2119_s21  ;;  %s1526_s24 = smul.u32 24, %s263_s17 }
  0x51   : > { %2509 = sst [smem:[#allocation24_spill]] %s2122_s13  ;;  %p2510_p8 = scmp.lt.s32.totalorder %s1895_s7, 4 }
  0x52   : > { %s1527_s15 = smul.u32 6, %s1891_s30  ;;  %s267_s8 = scalar_lea.vmem [#allocation5], %s1526_s24 }
  0x53   : > { %p2128_p10 = pnand %p2510_p8, %p2091_p4  ;;  %s275_s28 = sshll.u32 %s267_s8, 4  ;;  %s2134_s28 = int_to_ptr.vmem [resolvable:$true] %s275_s28 }
  0x54   : > { %s272_s9 = sadd.s32 %s1887_s29, %s1527_s15  ;;  %s2512_s5 = sld [smem:[#allocation30_spill]] }
  0x55   : > { %s1427_s10 = sshll.u32 %s272_s9, 7  ;;  %s2141_s18 = scalar_lea.sflag [#allocation6], %s263_s17 }
  0x56   : > { %p1741_p7 = pneg %p2128_p10 }
  0x5a   : > { %s2139_s16 = scalar_lea.hbm %s2512_s5, %s1427_s10  ;;  %s1744_s8 = scalar_lea.hbm %s2512_s5, 1536 }
  0x5b   : > { %s1739_s11 = scalar_lea.hbm %s2139_s16, 384  ;;  %p1745_p13 = scmp.lt.u32.totalorder %s2139_s16, %s2512_s5 }
  0x5c   : > { %p1740_p12 = scmp.ne.s32.totalorder %s2139_s16, %s1739_s11  ;;  %p1746_p0 = scmp.lt.u32.totalorder %s1744_s8, %s1739_s11 }
  0x5d   : > { %p1748_p5 = scmp.lt.u32.totalorder %s1739_s11, %s2139_s16 }
  0x5e   : > { %p1742_p4 = pnand %p1741_p7, %p1740_p12  ;;  %p1747_p3 = por %p1746_p0, %p1745_p13 }
  0x60   : > { %p1743_p9 = pneg %p1742_p4  ;;  %p1749_p8 = por %p1748_p5, %p1747_p3 }
  0x62   : > { %p1750_p1 = pnand %p1749_p8, %p1743_p9 }
  0x64   : > { %1753 = shalt.err (!%p1750_p1)
}
  0x65   : > { %s1754_s17 = scalar_lea.vmem %s2134_s28, 384  ;;  %s1900_s2 = smov [#allocation5]  }
  0x66   : > { %p1755_p12 = scmp.ne.s32.totalorder %s2134_s28, %s1754_s17  ;;  %s1759_s14 = sshll.u32 %s1900_s2, 4  ;;  %s1760_s14 = int_to_ptr.vmem [resolvable:$false] %s1759_s14 }
  0x67   : > { %s1761_s9 = scalar_lea.vmem %s1760_s14, 768  ;;  %p1762_p11 = scmp.lt.s32.totalorder %s2134_s28, %s1760_s14 }
  0x68   : > { %p1757_p4 = pnand %p1755_p12, %p1741_p7  ;;  %p1763_p13 = scmp.lt.s32.totalorder %s1761_s9, %s1754_s17 }
  0x6a   : > { %p1758_p2 = pneg %p1757_p4  ;;  %p1764_p0 = por %p1763_p13, %p1762_p11 }
  0x6c   : > { %p1765_p3 = pnand %p1764_p0, %p1758_p2 }
  0x6e   : > { %1768 = shalt.err (!%p1765_p3)
}
  0x6f   : > { %s1901_s11 = smov 256   ;;  %s2513_s15 = smov 8  }
  0x70   : > { %s2514_s8 = smov 128   ;;  %287 = sbr.rel (%p2071_p6) target bundleno = 593 (0x251), region = 44 }
  0x71   : > { %1603 = dma.hbm_to_vmem [thread:$0]  (!%p2128_p10), %s2139_s16, 384, %s2134_s28, %s2141_s18, %s1901_s11, %s2514_s8, %s2513_s15  }
  0x72   : > { %s289_s24 = sand.u32 (!%p2071_p6), 1, %s1871_s25   ;;  %p2515_p11 = scmp.ne.s32.totalorder (!%p2071_p6), %s2492_s12, 0 }
  0x73   : > { %s1429_s10 = sshll.u32 (!%p2071_p6), %s289_s24, 5  ;;  %s290_s17 = scalar_lea.sflag (!%p2071_p6), [#allocation3], %s289_s24 }
  0x74   : > { %s293_s2 = scalar_lea.vmem (!%p2071_p6), [#allocation2], %s1429_s10 }
  0x77   : > { %1842 = dma.done.wait (%p2515_p11), %s290_s17, 512  }
  0x78   : > { %1844 = vsyncadd (%p2515_p11), %s290_s17, 4294966784  ;;  %s2179_s6 = sand.u32 1, %s1859_s22   ;;  %p2516_p6 = scmp.ne.s32.totalorder %s2500_s20, 0 }
  0x79   : > { %s1528_s28 = smul.u32 24, %s2179_s6  ;;  %s299_s19 = scalar_lea.sflag [#allocation6], %s2179_s6 }
  0x7b   : > { %s2183_s16 = scalar_lea.vmem [#allocation5], %s1528_s28 }
  0x7c   : > { %1846 = dma.done.wait (%p2516_p6), %s299_s19, 384  }
  0x7d   : > { %1848 = vsyncadd (%p2516_p6), %s299_s19, 4294966912  ;;  %p340_p2 = scmp.lt.s32.totalorder %s1879_s27, 1  ;;  %v1902_v0 = vmov 0.0   ;;  %vm1903_vm0 = vmmov 0   ;;  %s2517_s4 = sld [smem:[#allocation29_spill]]  ;;  %vm357_vm1 = vcmask 64512  }
  0x7e   : > { %1476 = vmatprep.subr.mxu0 %v1902_v0  ;;  %1481 = vmatprep.subr.mxu1 %v1902_v0  ;;  %v356_v1 = vld [vmem:[%s293_s2] sm:$0xff]  ;;  %v1435_v2 = vld [vmem:[%s293_s2 + $0x8] sm:$0xff]  ;;  %v1437_v4 = vld [vmem:[%s293_s2 + $0x10] sm:$0xff]  ;;  %s2518_s0 = sld [smem:[#allocation25_spill]]  ;;  %s2519_s1 = sld [smem:[#allocation26_spill]]  ;;  %vm352_vm2 = vcmask 130048  }
  0x7f   : > { %1478 = vmatprep.mubr.msk.f32.mxu0 %vm1903_vm0, %v1902_v0  ;;  %1483 = vmatprep.mubr.msk.f32.mxu1 %vm1903_vm0, %v1902_v0  ;;  %s341_s12 = scalar_select %p340_p2, %s1879_s27, 1  ;;  %v1439_v6 = vld [vmem:[%s293_s2 + $0x18] sm:$0xff]  ;;  %v349_v15 = vld [vmem:[%s2183_s16 + $0x8] sm:$0xff]  ;;  %v350_v16 = vld [vmem:[%s2183_s16 + $0x10] sm:$0xff] }
  0x80   : > { %1477 = vmatpush3.msra.mxu0 %v356_v1  ;;  %1482 = vmatpush3.msra.mxu1 %v1435_v2  ;;  %s1904_s10 = smov 127   ;;  %s1905_s17 = smov 125   ;;  %v348_v14 = vld [vmem:[%s2183_s16] sm:$0xff] }
  0x81   : > { %s1430_s18 = sshll.u32 %s341_s12, 3  ;;  %1486 = vmatprep.subr.mxu0 %v1902_v0  ;;  %1491 = vmatprep.subr.mxu1 %v1902_v0  ;;  %s1906_s2 = smov 126  }
  0x82   : > { %s2520_s3 = sld [smem:[#allocation28_spill]]  ;;  %s1529_s12 = smul.u32 72, %s2179_s6 }
  0x83   : > { %s343_s9 = scalar_lea.vmem %s2517_s4, %s1430_s18 }
  0x84   : > { %v344_v3 = vld [vmem:[%s343_s9] sm:$0xff]  ;;  %s2238_s18 = scalar_lea.vmem [#allocation7], %s1529_s12 }
  0x85   : > { %v346_v5 = vld [vmem:[%s2518_s0] sm:$0x3f]  ;;  %1479 = vmatmul.mubr.msk.f32.vlgmr.msra.gmra.mrb[0].mxu0 %vm357_vm1, %v344_v3  ;;  %1484 = vmatmul.mubr.msk.f32.vlgmr.msra.gmra.mrb[0].mxu1 %vm357_vm1, %v344_v3  ;;  %1431 = vst.msk [vmem:[%s2238_s18 + $0x30] sm:$0xff] %vm352_vm2, %v348_v14  ;;  %1432 = vst.msk [vmem:[%s2238_s18 + $0x38] sm:$0xff] %vm352_vm2, %v349_v15 }
  0x86   : > { %1530 = vpush %v346_v5  ;;  %v2208_v7 = vld [vmem:[%s2519_s1] sm:$0x3f]  ;;  %1487 = vmatpush3.msra.mxu0 %v1437_v4  ;;  %1488 = vmatprep.mubr.msk.f32.mxu0 %vm1903_vm0, %v1902_v0  ;;  %v752_v8 = vrot.slane %v346_v5, 1  ;;  %v858_v9 = vrot.slane %v346_v5, 2  ;;  %v964_v10 = vrot.slane %v346_v5, 3  ;;  %v1070_v11 = vrot.slane %v346_v5, 4 }
  0x87   : > { %1532 = vpush %v2208_v7  ;;  %1492 = vmatpush3.msra.mxu1 %v1439_v6  ;;  %1493 = vmatprep.mubr.msk.f32.mxu1 %vm1903_vm0, %v1902_v0  ;;  %v1176_v12 = vrot.slane %v346_v5, 5  ;;  %v757_v21 = vrot.slane %v2208_v7, 1  ;;  %v863_v24 = vrot.slane %v2208_v7, 2  ;;  %v969_v27 = vrot.slane %v2208_v7, 3 }
  0x88   : > { %657 = vrot.lane.b32.xlu0 %v346_v5, %s1904_s10  ;;  %671 = vrot.lane.b32.xlu1 %v346_v5, %s1905_s17  ;;  %v2228_v13 = vld [vmem:[%s2520_s3] sm:$0xff]  ;;  %1433 = vst.msk [vmem:[%s2238_s18 + $0x40] sm:$0xff] %vm352_vm2, %v350_v16  ;;  %v1075_v32 = vrot.slane %v2208_v7, 4  ;;  %v1181_v35 = vrot.slane %v2208_v7, 5 }
  0x89   : > { %1489 = vmatmul.mubr.msk.f32.vlgmr.msra.gmra.mrb[2].mxu0 %vm357_vm1, %v344_v3  ;;  %1494 = vmatmul.mubr.msk.f32.vlgmr.msra.gmra.mrb[2].mxu1 %vm357_vm1, %v344_v3 }
  0x8a   : > { %1496 = vmatprep.subr.mxu0 %v1902_v0  ;;  %1501 = vmatprep.subr.mxu1 %v1902_v0 }
  0x8b   : > { %1498 = vmatprep.mubr.msk.f32.mxu0 %vm1903_vm0, %v1902_v0  ;;  %1503 = vmatprep.mubr.msk.f32.mxu1 %vm1903_vm0, %v1902_v0 }
  0x8c   : > { %664 = vrot.lane.b32.xlu0 %v346_v5, %s1906_s2  ;;  %762 = vrot.lane.b32.xlu1 %v752_v8, %s1904_s10 }
  0x8d   : > { %1497 = vmatpush3.msra.mxu0 %v2228_v13  ;;  %1502 = vmatpush3.msra.mxu1 %v2228_v13 }
  0x8e   : > { %1506 = vmatprep.subr.mxu0 %v1902_v0  ;;  %1511 = vmatprep.subr.mxu1 %v1902_v0 }
  0x90   : > { %769 = vrot.lane.b32.xlu0 %v752_v8, %s1906_s2  ;;  %776 = vrot.lane.b32.xlu1 %v752_v8, %s1905_s17 }
  0x94   : > { %868 = vrot.lane.b32.xlu0 %v858_v9, %s1904_s10  ;;  %875 = vrot.lane.b32.xlu1 %v858_v9, %s1906_s2 }
  0x98   : > { %882 = vrot.lane.b32.xlu0 %v858_v9, %s1905_s17  ;;  %974 = vrot.lane.b32.xlu1 %v964_v10, %s1904_s10 }
  0x9c   : > { %981 = vrot.lane.b32.xlu0 %v964_v10, %s1906_s2  ;;  %988 = vrot.lane.b32.xlu1 %v964_v10, %s1905_s17 }
  0xa0   : > { %1080 = vrot.lane.b32.xlu0 %v1070_v11, %s1904_s10  ;;  %1087 = vrot.lane.b32.xlu1 %v1070_v11, %s1906_s2 }
  0xa4   : > { %1094 = vrot.lane.b32.xlu0 %v1070_v11, %s1905_s17  ;;  %1186 = vrot.lane.b32.xlu1 %v1176_v12, %s1904_s10 }
  0xa8   : > { %1193 = vrot.lane.b32.xlu0 %v1176_v12, %s1906_s2  ;;  %1200 = vrot.lane.b32.xlu1 %v1176_v12, %s1905_s17 }
  0xb7   : > { %s2251_s16 = spop %1530 }
  0xb8   : > { %s2253_s14 = spop %1532  ;;  %v649_v40 = vstv %s2251_s16 }
  0xb9   : > { %v654_v41 = vstv %s2253_s14 }
  0xfa   : > { %v658_v17 = vpop.permute.xlu0 %657  ;;  %v672_v18 = vpop.permute.xlu1 %671 }
  0xfb   : > { %1534 = vpush %v658_v17 }
  0xfe   : > { %v665_v19 = vpop.permute.xlu0 %664  ;;  %v763_v20 = vpop.permute.xlu1 %762 }
  0xff   : > { %1536 = vpush %v665_v19 }
 0x100   : > { %1538 = vpush %v672_v18 }
 0x101   : > { %1540 = vpush %v752_v8 }
 0x102   : > { %v770_v22 = vpop.permute.xlu0 %769  ;;  %v777_v23 = vpop.permute.xlu1 %776  ;;  %1542 = vpush %v757_v21 }
 0x103   : > { %1544 = vpush %v763_v20 }
 0x104   : > { %1546 = vpush %v770_v22 }
 0x105   : > { %1548 = vpush %v777_v23 }
 0x106   : > { %v869_v25 = vpop.permute.xlu0 %868  ;;  %v876_v26 = vpop.permute.xlu1 %875  ;;  %1550 = vpush %v858_v9 }
 0x107   : > { %1552 = vpush %v863_v24 }
 0x108   : > { %1554 = vpush %v869_v25 }
 0x109   : > { %1556 = vpush %v876_v26 }
 0x10a   : > { %v883_v28 = vpop.permute.xlu0 %882  ;;  %v975_v29 = vpop.permute.xlu1 %974 }
 0x10b   : > { %1558 = vpush %v883_v28 }
 0x10c   : > { %1560 = vpush %v964_v10 }
 0x10d   : > { %1562 = vpush %v969_v27 }
 0x10e   : > { %v982_v30 = vpop.permute.xlu0 %981  ;;  %v989_v31 = vpop.permute.xlu1 %988  ;;  %1564 = vpush %v975_v29 }
 0x10f   : > { %1566 = vpush %v982_v30 }
 0x110   : > { %1568 = vpush %v989_v31 }
 0x111   : > { %1570 = vpush %v1070_v11 }
 0x112   : > { %v1081_v33 = vpop.permute.xlu0 %1080  ;;  %v1088_v34 = vpop.permute.xlu1 %1087  ;;  %1572 = vpush %v1075_v32 }
 0x113   : > { %1574 = vpush %v1081_v33 }
 0x114   : > { %1576 = vpush %v1088_v34 }
 0x116   : > { %v1095_v36 = vpop.permute.xlu0 %1094  ;;  %v1187_v37 = vpop.permute.xlu1 %1186 }
 0x117   : > { %1578 = vpush %v1095_v36 }
 0x118   : > { %1580 = vpush %v1176_v12 }
 0x119   : > { %1582 = vpush %v1181_v35 }
 0x11a   : > { %1584 = vpush %v1187_v37  ;;  %v1194_v38 = vpop.permute.xlu0 %1193  ;;  %v1201_v39 = vpop.permute.xlu1 %1200 }
 0x11b   : > { %1586 = vpush %v1194_v38 }
 0x11c   : > { %1588 = vpush %v1201_v39 }
 0x12c   : > { %s2255_s20 = spop %1534 }
 0x12d   : > { %v660_v42 = vstv %s2255_s20 }
 0x130   : > { %s2257_s9 = spop %1536 }
 0x131   : > { %s2259_s11 = spop %1538  ;;  %v667_v43 = vstv %s2257_s9 }
 0x132   : > { %s2261_s15 = spop %1540  ;;  %v674_v44 = vstv %s2259_s11 }
 0x133   : > { %s2263_s8 = spop %1542  ;;  %v754_v45 = vstv %s2261_s15 }
 0x134   : > { %s2265_s24 = spop %1544  ;;  %v759_v46 = vstv %s2263_s8 }
 0x135   : > { %s2267_s10 = spop %1546  ;;  %v765_v47 = vstv %s2265_s24 }
 0x136   : > { %s2269_s17 = spop %1548  ;;  %v772_v48 = vstv %s2267_s10 }
 0x137   : > { %s2271_s2 = spop %1550  ;;  %v779_v49 = vstv %s2269_s17 }
 0x138   : > { %s2273_s28 = spop %1552  ;;  %v860_v50 = vstv %s2271_s2 }
 0x139   : > { %s2275_s19 = spop %1554  ;;  %v865_v51 = vstv %s2273_s28 }
 0x13a   : > { %s2277_s12 = spop %1556  ;;  %v871_v52 = vstv %s2275_s19 }
 0x13b   : > { %v878_v53 = vstv %s2277_s12 }
 0x13c   : > { %s2279_s0 = spop %1558 }
 0x13d   : > { %s2281_s1 = spop %1560  ;;  %v885_v54 = vstv %s2279_s0  ;;  %s2521_s0 = sld [smem:[#allocation16_spill]] }
 0x13e   : > { %s2283_s3 = spop %1562  ;;  %v966_v55 = vstv %s2281_s1 }
 0x13f   : > { %s2285_s4 = spop %1564  ;;  %v971_v56 = vstv %s2283_s3 }
 0x140   : > { %s2287_s5 = spop %1566  ;;  %v977_v57 = vstv %s2285_s4  ;;  %s1297_s4 = sshll.u32 %s2238_s18, 4  ;;  %s2372_s4 = int_to_ptr.vmem [resolvable:$true] %s1297_s4 }
 0x141   : > { %s2289_s30 = spop %1568  ;;  %v984_v58 = vstv %s2287_s5 }
 0x142   : > { %s2291_s29 = spop %1570  ;;  %v991_v59 = vstv %s2289_s30  ;;  %s1907_s30 = smov [#allocation7]  }
 0x143   : > { %s2293_s21 = spop %1572  ;;  %v1072_v60 = vstv %s2291_s29  ;;  %s1590_s1 = smul.u32 18, %s2521_s0 }
 0x144   : > { %s2295_s26 = spop %1574  ;;  %v1077_v61 = vstv %s2293_s21  ;;  %s2522_s21 = sld [smem:[#allocation21_spill]] }
 0x145   : > { %s2297_s25 = spop %1576  ;;  %v1083_v62 = vstv %s2295_s26  ;;  %s1294_s3 = sadd.s32 %s1879_s27, %s1590_s1 }
 0x146   : > { %v1090_v63 = vstv %s2297_s25  ;;  %s1452_s5 = sshll.u32 %s1294_s3, 7  ;;  %s2523_s25 = sld [smem:[#allocation31_spill]] }
 0x147   : > { %s1283_s27 = scalar_lea.sflag [#allocation4], %s2179_s6  ;;  %s1769_s29 = scalar_lea.vmem %s2372_s4, 1152 }
 0x148   : > { %s2299_s13 = spop %1578  ;;  %p1770_p1 = scmp.ne.s32.totalorder %s2372_s4, %s1769_s29 }
 0x149   : > { %s2301_s23 = spop %1580  ;;  %v1097_v1 = vstv %s2299_s13  ;;  %s1773_s9 = sshll.u32 %s1907_s30, 4  ;;  %s1774_s9 = int_to_ptr.vmem [resolvable:$false] %s1773_s9 }
 0x14a   : > { %s2305_s22 = spop %1582  ;;  %v1178_v2 = vstv %s2301_s23  ;;  %p2525_p10 = scmp.ne.s32.totalorder %s2522_s21, 0 }
 0x14b   : > { %s2315_s16 = spop %1584  ;;  %v1183_v5 = vstv %s2305_s22  ;;  %s1775_s11 = scalar_lea.vmem %s1774_s9, 2304 }
 0x14c   : > { %s2321_s14 = spop %1586  ;;  %v1189_v6 = vstv %s2315_s16  ;;  %s2524_s13 = smov %s2523_s25 }
 0x14d   : > { %s2327_s20 = spop %1588  ;;  %v1196_v7 = vstv %s2321_s14  ;;  %s2381_s26 = scalar_lea.hbm %s2523_s25, %s1452_s5 }
 0x14e   : > { %v1203_v8 = vstv %s2327_s20  ;;  %p1771_p7 = pnand %p1770_p1, %p2525_p10  ;;  %p1776_p5 = scmp.lt.s32.totalorder %s2372_s4, %s1774_s9 }
 0x14f   : > { %p1777_p8 = scmp.lt.s32.totalorder %s1775_s11, %s1769_s29 }
 0x150   : > { %p1772_p9 = pneg %p1771_p7 }
 0x151   : > { %p1778_p12 = por %p1777_p8, %p1776_p5 }
 0x153   : > { %p1779_p4 = pnand %p1778_p12, %p1772_p9 }
 0x158   : > { %v427_v3 = vpop.f32.mrb[0].mxu0  ;;  %v499_v4 = vpop.f32.mrb[0].mxu1 }
 0x159   : > { %v651_v9 = vmul.f32 %v649_v40, %v427_v3  ;;  %v756_v10 = vmul.f32 %v754_v45, %v427_v3  ;;  %v862_v11 = vmul.f32 %v860_v50, %v427_v3  ;;  %v968_v12 = vmul.f32 %v966_v55, %v427_v3  ;;  %v1480_v14 = vpop.f32.mrb[1].mxu0  ;;  %v1485_v15 = vpop.f32.mrb[1].mxu1 }
 0x15a   : > { %v662_v16 = vmul.f32 %v660_v42, %v499_v4  ;;  %v767_v17 = vmul.f32 %v765_v47, %v499_v4  ;;  %v873_v18 = vmul.f32 %v871_v52, %v499_v4  ;;  %v979_v19 = vmul.f32 %v977_v57, %v499_v4 }
 0x15b   : > { %v656_v20 = vadd.f32 %v654_v41, %v651_v9  ;;  %v761_v21 = vadd.f32 %v759_v46, %v756_v10  ;;  %v867_v22 = vadd.f32 %v865_v51, %v862_v11  ;;  %v973_v23 = vadd.f32 %v971_v56, %v968_v12 }
 0x15c   : > { %v1074_v24 = vmul.f32 %v1072_v60, %v427_v3  ;;  %v1085_v25 = vmul.f32 %v1083_v62, %v499_v4  ;;  %v1180_v26 = vmul.f32 %v1178_v2, %v427_v3  ;;  %v1191_v27 = vmul.f32 %v1189_v6, %v499_v4  ;;  %v571_v28 = vpop.f32.mrb[2].mxu0  ;;  %v643_v29 = vpop.f32.mrb[2].mxu1 }
 0x15d   : > { %v663_v30 = vadd.f32 %v662_v16, %v656_v20  ;;  %v768_v31 = vadd.f32 %v767_v17, %v761_v21  ;;  %v874_v32 = vadd.f32 %v873_v18, %v867_v22  ;;  %v980_v33 = vadd.f32 %v979_v19, %v973_v23  ;;  %v1490_v34 = vpop.f32.mrb[3].mxu0  ;;  %v1495_v35 = vpop.f32.mrb[3].mxu1 }
 0x15e   : > { %v1079_v36 = vadd.f32 %v1077_v61, %v1074_v24  ;;  %v1185_v37 = vadd.f32 %v1183_v5, %v1180_v26  ;;  %v669_v38 = vmul.f32 %v667_v43, %v571_v28  ;;  %v774_v39 = vmul.f32 %v772_v48, %v571_v28 }
 0x15f   : > { %v880_v40 = vmul.f32 %v878_v53, %v571_v28  ;;  %v986_v41 = vmul.f32 %v984_v58, %v571_v28  ;;  %v1092_v42 = vmul.f32 %v1090_v63, %v571_v28  ;;  %v676_v45 = vmul.f32 %v674_v44, %v643_v29 }
 0x160   : > { %v1086_v46 = vadd.f32 %v1085_v25, %v1079_v36  ;;  %v1192_v47 = vadd.f32 %v1191_v27, %v1185_v37  ;;  %v670_v50 = vadd.f32 %v669_v38, %v663_v30  ;;  %v775_v51 = vadd.f32 %v774_v39, %v768_v31 }
 0x161   : > { %v881_v52 = vadd.f32 %v880_v40, %v874_v32  ;;  %v987_v55 = vadd.f32 %v986_v41, %v980_v33  ;;  %v781_v56 = vmul.f32 %v779_v49, %v643_v29  ;;  %v887_v57 = vmul.f32 %v885_v54, %v643_v29 }
 0x162   : > { %v1093_v60 = vadd.f32 %v1092_v42, %v1086_v46  ;;  %v993_v62 = vmul.f32 %v991_v59, %v643_v29  ;;  %v1099_v61 = vmul.f32 %v1097_v1, %v643_v29  ;;  %v1198_v2 = vmul.f32 %v1196_v7, %v571_v28 }
 0x163   : > { %v1205_v43 = vmul.f32 %v1203_v8, %v643_v29  ;;  %v677_v48 = vadd.f32 %v676_v45, %v670_v50  ;;  %v782_v53 = vadd.f32 %v781_v56, %v775_v51  ;;  %v888_v58 = vadd.f32 %v887_v57, %v881_v52 }
 0x164   : > { %v1199_v63 = vadd.f32 %v1198_v2, %v1192_v47  ;;  %v994_v3 = vadd.f32 %v993_v62, %v987_v55  ;;  %v1100_v44 = vadd.f32 %v1099_v61, %v1093_v60 }
 0x165   : > { %1499 = vmatmul.mubr.msk.f32.vlgmr.msra.gmra.mrb[4].mxu0 %vm357_vm1, %v677_v48  ;;  %1504 = vmatmul.mubr.msk.f32.vlgmr.msra.gmra.mrb[4].mxu1 %vm357_vm1, %v782_v53 }
 0x166   : > { %v1206_v4 = vadd.f32 %v1205_v43, %v1199_v63  ;;  %1507 = vmatpush3.msra.mxu0 %v2228_v13  ;;  %1512 = vmatpush3.msra.mxu1 %v2228_v13 }
 0x167   : > { %1508 = vmatprep.mubr.msk.f32.mxu0 %vm1903_vm0, %v1902_v0  ;;  %1513 = vmatprep.mubr.msk.f32.mxu1 %vm1903_vm0, %v1902_v0 }
 0x168   : > { %1516 = vmatprep.subr.mxu0 %v1902_v0  ;;  %1521 = vmatprep.subr.mxu1 %v1902_v0 }
 0x169   : > { %1509 = vmatmul.mubr.msk.f32.vlgmr.msra.gmra.mrb[6].mxu0 %vm357_vm1, %v888_v58  ;;  %1514 = vmatmul.mubr.msk.f32.vlgmr.msra.gmra.mrb[6].mxu1 %vm357_vm1, %v994_v3 }
 0x16a   : > { %1517 = vmatpush3.msra.mxu0 %v2228_v13  ;;  %1522 = vmatpush3.msra.mxu1 %v2228_v13 }
 0x16b   : > { %1518 = vmatprep.mubr.msk.f32.mxu0 %vm1903_vm0, %v1902_v0  ;;  %1523 = vmatprep.mubr.msk.f32.mxu1 %vm1903_vm0, %v1902_v0 }
 0x16d   : > { %1519 = vmatmul.mubr.msk.f32.vlgmr.msra.gmra.mrb[8].mxu0 %vm357_vm1, %v1100_v44  ;;  %1524 = vmatmul.mubr.msk.f32.vlgmr.msra.gmra.mrb[8].mxu1 %vm357_vm1, %v1206_v4 }
 0x238   : > { %v747_v49 = vpop.f32.mrb[4].mxu0  ;;  %v852_v54 = vpop.f32.mrb[4].mxu1 }
 0x239   : > { %751 = vst.msk [vmem:[%s2238_s18] sm:$0xff] %vm352_vm2, %v747_v49  ;;  %1443 = vst.msk [vmem:[%s2238_s18 + $0x8] sm:$0xff] %vm352_vm2, %v852_v54  ;;  %v1500_v13 = vpop.f32.mrb[5].mxu0  ;;  %v1505_v59 = vpop.f32.mrb[5].mxu1 }
 0x23c   : > { %v958_v0 = vpop.f32.mrb[6].mxu0  ;;  %v1064_v1 = vpop.f32.mrb[6].mxu1 }
 0x23d   : > { %1445 = vst.msk [vmem:[%s2238_s18 + $0x10] sm:$0xff] %vm352_vm2, %v958_v0  ;;  %1447 = vst.msk [vmem:[%s2238_s18 + $0x18] sm:$0xff] %vm352_vm2, %v1064_v1  ;;  %v1510_v5 = vpop.f32.mrb[7].mxu0  ;;  %v1515_v6 = vpop.f32.mrb[7].mxu1 }
 0x240   : > { %v1170_v7 = vpop.f32.mrb[8].mxu0  ;;  %v1276_v8 = vpop.f32.mrb[8].mxu1 }
 0x241   : > { %1449 = vst.msk [vmem:[%s2238_s18 + $0x20] sm:$0xff] %vm352_vm2, %v1170_v7  ;;  %1451 = vst.msk [vmem:[%s2238_s18 + $0x28] sm:$0xff] %vm352_vm2, %v1276_v8  ;;  %v1520_v9 = vpop.f32.mrb[9].mxu0  ;;  %v1525_v10 = vpop.f32.mrb[9].mxu1 }
 0x242   : > { %1782 = shalt.err (!%p1779_p4)
}
 0x243   : > { %s1783_s18 = scalar_lea.hbm %s2381_s26, 1152  ;;  %s1787_s24 = scalar_lea.hbm %s2524_s13, 4608 }
 0x244   : > { %p1784_p13 = scmp.ne.s32.totalorder %s2381_s26, %s1783_s18  ;;  %p1788_p11 = scmp.lt.u32.totalorder %s2381_s26, %s2524_s13 }
 0x245   : > { %p1789_p6 = scmp.lt.u32.totalorder %s1787_s24, %s1783_s18  ;;  %p1791_p1 = scmp.lt.u32.totalorder %s1783_s18, %s2381_s26 }
 0x246   : > { %p1785_p0 = pnand %p1784_p13, %p2525_p10 }
 0x247   : > { %p1790_p2 = por %p1789_p6, %p1788_p11 }
 0x248   : > { %p1786_p3 = pneg %p1785_p0 }
 0x249   : > { %p1792_p7 = por %p1791_p1, %p1790_p2 }
 0x24b   : > { %p1793_p9 = pnand %p1792_p7, %p1786_p3 }
 0x24d   : > { %1796 = shalt.err (!%p1793_p9)
}
 0x24e   : > { %s1908_s2 = smov 128   ;;  %s1909_s28 = smov 256  }
 0x24f   : > { %s1910_s19 = smov 8  }
 0x250   : > { %1595 = dma.vmem_to_hbm [thread:$0]  (%p2525_p10), %s2372_s4, 1152, %s2381_s26, %s1283_s27, %s1908_s2, %s1909_s28, %s1910_s19  }
 0x251 PF: > { %s2526_s12 = sld [smem:[#allocation11_spill]]  ;;  %s2527_s16 = sld [smem:[#allocation22_spill]] }
 0x252   : > { %p1609_p5 = scmp.ge.s32.totalorder %s1895_s7, 2 }
 0x257   : > { %s1312_s14 = sand.u32 1, %s2526_s12   ;;  %p2528_p8 = scmp.ne.s32.totalorder %s2527_s16, 0 }
 0x258   : > { %s1313_s20 = scalar_lea.sflag [#allocation4], %s1312_s14 }
 0x259   : > { %p1605_p12 = pnand %p1609_p5, %p2528_p8 }
 0x25b   : > { %1850 = dma.done.wait (!%p1605_p12), %s1313_s20, 1152  }
 0x25c   : > { %1852 = vsyncadd (!%p1605_p12), %s1313_s20, 4294966144  ;;  %s25_s7 = sadd.s32 1, %s1895_s7   ;;  %s2529_s21 = sld [smem:[#allocation12_spill]] }
 0x25d   : > { %p22_p4 = scmp.ge.s32.totalorder %s25_s7, 6   ;;  %s2530_s22 = sld [smem:[#allocation13_spill]] }
 0x25e   : > { %s2531_s23 = sld [smem:[#allocation24_spill]]  ;;  %s2532_s24 = sld [smem:[#allocation14_spill]] }
 0x25f   : > { %s2533_s25 = sld [smem:[#allocation15_spill]]  ;;  %s2534_s26 = sld [smem:[#allocation23_spill]] }
 0x260   : > { %s2535_s27 = sld [smem:[#allocation17_spill]]  ;;  %s2536_s28 = sld [smem:[#allocation18_spill]] }
 0x261   : > { %s2537_s29 = sld [smem:[#allocation19_spill]]  ;;  %s2538_s30 = sld [smem:[#allocation20_spill]] }
 0x262   :  { %24 = sbr.rel (!%p22_p4) target bundleno = 19 (0x13), region = 114 }
 0x269   :  { %1318 = vsyncpa [#allocation3], 1 }
 0x26a   :  { %1320 = vsyncpa [#allocation3 + $0x1], 1 }
 0x26b   :  { %1321 = vsyncpa [#allocation6], 1 }
 0x26c   :  { %1323 = vsyncpa [#allocation6 + $0x1], 1 }
 0x26d   :  { %1324 = vsyncpa [#allocation4], 1 }
 0x26e   :  { %1326 = vsyncpa [#allocation4 + $0x1], 1 }

</bundles_post_ra>
